<compile_context>
chip_gen: v7x
topology: tpu7x:2x2x1
jax: 0.10.0
libtpu: 0.0.40
codegen_flags: <defaults>
</compile_context>

<pallas_src>
import jax
import jax.numpy as jnp
from jax.experimental import pallas as pl
from jax.experimental.pallas import tpu as pltpu


def _round_up(x, m):
    return ((x + m - 1) // m) * m


# -----------------------------------------------------------------------------
# Kernel 1: tiled Ahat propagation + relu + per-row-tile mean-pool partial
# grid = (num_row_tiles i, num_k_tiles k); k is the reduction axis (last, "arbitrary")
# -----------------------------------------------------------------------------
def gcn_pool_kernel(ahat_ref, xw1_ref, b1_ref, poolA_ref, part_ref, h1_acc):
    k = pl.program_id(1)

    @pl.when(k == 0)
    def _():
        h1_acc[...] = jnp.zeros_like(h1_acc)

    # bf16 x bf16 MXU matmul, f32 accumulation
    h1_acc[...] += jnp.dot(ahat_ref[...], xw1_ref[...],
                           preferred_element_type=jnp.float32)

    @pl.when(k == pl.num_programs(1) - 1)
    def _():
        # bias + relu epilogue kept in f32 on the VPU (co-issues with MXU drain)
        h1 = jnp.maximum(h1_acc[...] + b1_ref[...], 0.0)
        # pooled partial of this row tile: (G, tn) @ (tn, H) -> (G, H)
        part_ref[0] = jnp.dot(poolA_ref[...], h1,
                              preferred_element_type=jnp.float32)


# -----------------------------------------------------------------------------
# Kernel 2: tiny epilogue — sum row-tile partials, apply folded head W2fc + bfold
# -----------------------------------------------------------------------------
def epilogue_kernel(part_ref, w_ref, b_ref, out_ref):
    pooled = jnp.sum(part_ref[...], axis=0)                      # (G, H)
    out_ref[...] = (jnp.dot(pooled, w_ref[...],
                            preferred_element_type=jnp.float32) + b_ref[...])


def gnn_forward_pallas(x_enc, ahat, w1, b1, w2, b2, pool, wfc, bfc,
                       *, tn=512, tk=512):
    """Forward pass matching the PyTorch GNN module (see algebra in the header)."""
    N = ahat.shape[0]
    G = pool.shape[0]
    H = w1.shape[1]
    out_dim = wfc.shape[1]

    # ---- XLA glue: algebraic pre-fusions (delete 2nd propagation, hoist tiny matmuls) ----
    xw1 = x_enc @ w1                 # (N, H)   K=9 matmul hoisted off the MXU hot path
    poolA = pool @ ahat              # (G, N)   fuses pooling with the 2nd propagation
    w2fc = w2 @ wfc                  # (H, out) fold conv2 weight into the head
    bfold = b2 @ wfc + bfc           # (1, out) valid because pool rows sum to 1

    # ---- tiling / padding: tn (row tile) and tk (K tile), both multiples of 128 ----
    n_pad = _round_up(N, 128)
    tn = max(128, min((tn // 128) * 128, n_pad))
    tk = max(128, min((tk // 128) * 128, n_pad))
    while n_pad % tn:
        tn -= 128
    while n_pad % tk:
        tk -= 128
    num_i, num_k = n_pad // tn, n_pad // tk

    # zero-pad: padded Ahat rows/cols and XW1 rows contribute nothing, and padded
    # poolA columns are zero, so padded h1 rows never reach the output.
    ahat_p = jnp.zeros((n_pad, n_pad), jnp.float32).at[:N, :N].set(ahat)
    xw1_p = jnp.zeros((n_pad, H), jnp.float32).at[:N, :].set(xw1)
    poolA_p = jnp.zeros((G, n_pad), jnp.float32).at[:, :N].set(poolA)

    # bf16 for the HBM-bound adjacency propagation; accumulation stays f32 in-kernel.
    ahat_bf = ahat_p.astype(jnp.bfloat16)
    xw1_bf = xw1_p.astype(jnp.bfloat16)

    # TODO(synk): for production molecular batches (avg degree ~2-3), replace the dense
    # Ahat tiles with a block-sparse formulation via PrefetchScalarGridSpec (prefetch
    # per-row-tile lists of nonzero column tiles and index_map into them).

    partials = pl.pallas_call(
        gcn_pool_kernel,
        grid=(num_i, num_k),
        in_specs=[
            pl.BlockSpec((tn, tk), lambda i, k: (i, k)),     # Ahat tile (bf16)
            pl.BlockSpec((tk, H), lambda i, k: (k, 0)),      # XW1 K-tile (bf16)
            pl.BlockSpec((1, H), lambda i, k: (0, 0)),       # b1
            pl.BlockSpec((G, tn), lambda i, k: (0, i)),      # poolA column tile (f32)
        ],
        out_specs=pl.BlockSpec((1, G, H), lambda i, k: (i, 0, 0)),
        out_shape=jax.ShapeDtypeStruct((num_i, G, H), jnp.float32),
        scratch_shapes=[pltpu.VMEM((tn, H), jnp.float32)],   # f32 accumulator over K
        compiler_params=pltpu.CompilerParams(
            dimension_semantics=("parallel", "arbitrary"),   # rows shard across TCs (v7x)
            vmem_limit_bytes=48 * 1024 * 1024),              # > default scoped, < v7x physical
    )(ahat_bf, xw1_bf, b1, poolA_p)

    out = pl.pallas_call(
        epilogue_kernel,
        grid=(1,),
        in_specs=[
            pl.BlockSpec((num_i, G, H), lambda i: (0, 0, 0)),
            pl.BlockSpec((H, out_dim), lambda i: (0, 0)),
            pl.BlockSpec((1, out_dim), lambda i: (0, 0)),
        ],
        out_specs=pl.BlockSpec((G, out_dim), lambda i: (0, 0)),
        out_shape=jax.ShapeDtypeStruct((G, out_dim), jnp.float32),
        compiler_params=pltpu.CompilerParams(
            dimension_semantics=("arbitrary",)),
    )(partials, w2fc, bfold)
    return out


# -----------------------------------------------------------------------------
# Glue (plain JAX): categorical embeddings, dense GCN normalization, pooling matrix
# -----------------------------------------------------------------------------
def atom_bond_encode(tables, feats):
    """OGB-style encoder: sum of per-feature embeddings. feats: (N, F) int32."""
    emb = jnp.zeros((feats.shape[0], tables[0].shape[1]), jnp.float32)
    for f, tab in enumerate(tables):
        emb = emb + jnp.take(tab, feats[:, f], axis=0)
    return emb


def gcn_norm_dense(edge_index, num_nodes):
    """Dense D^{-1/2} (A + I) D^{-1/2} with A[dst, src] = 1 (PyG gcn_norm semantics)."""
    src, dst = edge_index[0], edge_index[1]
    a = jnp.zeros((num_nodes, num_nodes), jnp.float32)
    a = a.at[dst, src].add(1.0)
    a = a + jnp.eye(num_nodes, dtype=jnp.float32)            # self loops
    deg = jnp.sum(a, axis=1)
    dinv = jnp.where(deg > 0, 1.0 / jnp.sqrt(deg), 0.0)
    return dinv[:, None] * a * dinv[None, :]


def mean_pool_matrix(batch, num_graphs):
    """(G, N) matrix whose rows average the nodes of each graph."""
    onehot = (batch[None, :] == jnp.arange(num_graphs)[:, None]).astype(jnp.float32)
    counts = jnp.maximum(onehot.sum(axis=1, keepdims=True), 1.0)
    return onehot / counts


if __name__ == "__main__":
    # ---- small, deterministic problem (ogbg-molpcba-like feature dims) ----
    N = 200           # nodes (pads to 256 -> 2x2 grid with tn=tk=128 below)
    E = 400           # edges
    node_dim = 9      # dataset.num_node_features
    edge_dim = 3      # dataset.num_edge_features
    hidden_dim = 128
    out_dim = 128     # self.fc = Linear(hidden_dim, 128)
    G = 2             # graphs in batch
    vocab = 16        # categorical vocab per feature (synthetic)

    key = jax.random.PRNGKey(0)
    keys = jax.random.split(key, 12)

    # inputs
    x_feats = jax.random.randint(keys[0], (N, node_dim), 0, vocab, dtype=jnp.int32)
    edge_attr = jax.random.randint(keys[1], (E, edge_dim), 0, vocab, dtype=jnp.int32)
    edge_index = jax.random.randint(keys[2], (2, E), 0, N, dtype=jnp.int32)
    batch = jnp.concatenate([jnp.zeros(N // 2, jnp.int32), jnp.ones(N - N // 2, jnp.int32)])

    # parameters (deterministic synthetic init)
    atom_tables = [0.1 * jax.random.normal(k, (vocab, node_dim), jnp.float32)
                   for k in jax.random.split(keys[3], node_dim)]
    bond_tables = [0.1 * jax.random.normal(k, (vocab, edge_dim), jnp.float32)
                   for k in jax.random.split(keys[4], edge_dim)]
    w1 = jax.random.normal(keys[5], (node_dim, hidden_dim), jnp.float32) / jnp.sqrt(node_dim)
    b1 = jnp.zeros((1, hidden_dim), jnp.float32)
    w2 = jax.random.normal(keys[6], (hidden_dim, hidden_dim), jnp.float32) / jnp.sqrt(hidden_dim)
    b2 = jnp.zeros((1, hidden_dim), jnp.float32)
    wfc = jax.random.normal(keys[7], (hidden_dim, out_dim), jnp.float32) / jnp.sqrt(hidden_dim)
    bfc = 0.01 * jax.random.normal(keys[8], (1, out_dim), jnp.float32)

    # glue: encoders (gathers), dense GCN-normalized adjacency, mean-pool matrix
    x_enc = atom_bond_encode(atom_tables, x_feats)            # (N, node_dim)
    edge_emb = atom_bond_encode(bond_tables, edge_attr)       # (E, edge_dim)
    # NOTE: edge_emb matches the reference forward, but GCNConv ignores edge_attr,
    # so it does not feed the kernel (same as the PyTorch module's semantics).
    ahat = gcn_norm_dense(edge_index, N)                      # (N, N)
    pool = mean_pool_matrix(batch, G)                         # (G, N)

    # small tiles in the demo so the (row, K) tiling + accumulator path is exercised
    out = gnn_forward_pallas(x_enc, ahat, w1, b1, w2, b2, pool, wfc, bfc, tn=128, tk=128)
    out = jax.block_until_ready(out)

    # pure-JAX f32 reference of the original forward math
    h1 = jnp.maximum(ahat @ (x_enc @ w1) + b1, 0.0)
    h2 = ahat @ (h1 @ w2) + b2
    ref = (pool @ h2) @ wfc + bfc

    assert out.shape == (G, out_dim)
    err = float(jnp.max(jnp.abs(out - ref)))
    assert err < 2e-2, f"max abs err {err}"   # bf16 adjacency/features, f32 accumulation

    print("KERNEL_OK")
</pallas_src>

<mosaic_0001>
module attributes {stable_mosaic.version = 11 : i64} {
  func.func @gcn_pool_kernel(%arg0: i32, %arg1: i32, %arg2: memref<128x128xbf16, #tpu.memory_space<vmem>>, %arg3: memref<128x128xbf16, #tpu.memory_space<vmem>>, %arg4: memref<1x128xf32, #tpu.memory_space<vmem>>, %arg5: memref<2x128xf32, #tpu.memory_space<vmem>>, %arg6: memref<1x2x128xf32, #tpu.memory_space<vmem>>, %arg7: memref<128x128xf32, #tpu.memory_space<vmem>>) attributes {dimension_semantics = [#tpu.dimension_semantics<parallel>, #tpu.dimension_semantics<arbitrary>], iteration_bounds = array<i64: 2, 2>, scalar_prefetch = 0 : i64, scratch_operands = 1 : i64, tpu.core_type = #tpu.core_type<tc>, window_params = [{transform_indices = @transform_0, window_bounds = array<i64: 128, 128>}, {transform_indices = @transform_1, window_bounds = array<i64: 128, 128>}, {pipeline_mode = #tpu.pipeline_mode<synchronous>, transform_indices = @transform_2, window_bounds = array<i64: 1, 128>}, {transform_indices = @transform_3, window_bounds = array<i64: 2, 128>}, {transform_indices = @transform_4, window_bounds = array<i64: 1, 2, 128>}]} {
    %c0_i32 = arith.constant 0 : i32
    %0 = arith.cmpi eq, %arg1, %c0_i32 : i32
    %1 = arith.extui %0 : i1 to i32
    %c0_i32_0 = arith.constant 0 : i32
    %2 = arith.cmpi ne, %1, %c0_i32_0 : i32
    scf.if %2 {
      %cst_9 = arith.constant 0.000000e+00 : f32
      %12 = vector.broadcast %cst_9 : f32 to vector<128x128xf32>
      %c0_10 = arith.constant 0 : index
      %c0_11 = arith.constant 0 : index
      %13 = vector.load %arg7[%c0_10, %c0_11] : memref<128x128xf32, #tpu.memory_space<vmem>>, vector<128x128xf32>
      tpu.vector_store %arg7[%c0_10, %c0_11], %12 {strides = array<i32>} : memref<128x128xf32, #tpu.memory_space<vmem>>, vector<128x128xf32>,
    } else {
    }
    %c0 = arith.constant 0 : index
    %c0_1 = arith.constant 0 : index
    %3 = vector.load %arg7[%c0, %c0_1] : memref<128x128xf32, #tpu.memory_space<vmem>>, vector<128x128xf32>
    %c0_2 = arith.constant 0 : index
    %c0_3 = arith.constant 0 : index
    %4 = vector.load %arg2[%c0_2, %c0_3] : memref<128x128xbf16, #tpu.memory_space<vmem>>, vector<128x128xbf16>
    %c0_4 = arith.constant 0 : index
    %c0_5 = arith.constant 0 : index
    %5 = vector.load %arg3[%c0_4, %c0_5] : memref<128x128xbf16, #tpu.memory_space<vmem>>, vector<128x128xbf16>
    %cst = arith.constant dense<0.000000e+00> : vector<128x128xf32>
    %6 = tpu.matmul %4, %5, %cst {dimension_numbers = #tpu.dot_dimension_numbers<[1], [0], [0], [1], [0, 0, 1, 1], [], []>} : vector<128x128xbf16>, vector<128x128xbf16>, vector<128x128xf32> -> vector<128x128xf32>
    %7 = arith.addf %3, %6 : vector<128x128xf32>
    %c0_6 = arith.constant 0 : index
    %c0_7 = arith.constant 0 : index
    %8 = vector.load %arg7[%c0_6, %c0_7] : memref<128x128xf32, #tpu.memory_space<vmem>>, vector<128x128xf32>
    tpu.vector_store %arg7[%c0_6, %c0_7], %7 {strides = array<i32>} : memref<128x128xf32, #tpu.memory_space<vmem>>, vector<128x128xf32>,
    %c1_i32 = arith.constant 1 : i32
    %9 = arith.cmpi eq, %arg1, %c1_i32 : i32
    %10 = arith.extui %9 : i1 to i32
    %c0_i32_8 = arith.constant 0 : i32
    %11 = arith.cmpi ne, %10, %c0_i32_8 : i32
    scf.if %11 {
      %c0_9 = arith.constant 0 : index
      %c0_10 = arith.constant 0 : index
      %12 = vector.load %arg7[%c0_9, %c0_10] : memref<128x128xf32, #tpu.memory_space<vmem>>, vector<128x128xf32>
      %c0_11 = arith.constant 0 : index
      %c0_12 = arith.constant 0 : index
      %13 = vector.load %arg4[%c0_11, %c0_12] : memref<1x128xf32, #tpu.memory_space<vmem>>, vector<1x128xf32>
      %14 = vector.broadcast %13 : vector<1x128xf32> to vector<128x128xf32>
      %15 = arith.addf %12, %14 : vector<128x128xf32>
      %cst_13 = arith.constant 0.000000e+00 : f32
      %16 = vector.broadcast %cst_13 : f32 to vector<128x128xf32>
      %17 = arith.maximumf %15, %16 : vector<128x128xf32>
      %c0_14 = arith.constant 0 : index
      %c0_15 = arith.constant 0 : index
      %18 = vector.load %arg5[%c0_14, %c0_15] : memref<2x128xf32, #tpu.memory_space<vmem>>, vector<2x128xf32>
      %cst_16 = arith.constant dense<0.000000e+00> : vector<2x128xf32>
      %19 = tpu.matmul %18, %17, %cst_16 {dimension_numbers = #tpu.dot_dimension_numbers<[1], [0], [0], [1], [0, 0, 1, 1], [], []>} : vector<2x128xf32>, vector<128x128xf32>, vector<2x128xf32> -> vector<2x128xf32>
      %c0_17 = arith.constant 0 : index
      %c0_18 = arith.constant 0 : index
      %c0_19 = arith.constant 0 : index
      %20 = vector.load %arg6[%c0_17, %c0_18, %c0_19] : memref<1x2x128xf32, #tpu.memory_space<vmem>>, vector<1x2x128xf32>
      %21 = vector.shape_cast %20 : vector<1x2x128xf32> to vector<2x128xf32>
      %22 = vector.shape_cast %19 : vector<2x128xf32> to vector<1x2x128xf32>
      tpu.vector_store %arg6[%c0_17, %c0_18, %c0_19], %22 {strides = array<i32>} : memref<1x2x128xf32, #tpu.memory_space<vmem>>, vector<1x2x128xf32>,
    } else {
    }
    return
  }
  func.func @transform_0(%arg0: i32, %arg1: i32) -> (i32, i32) {
    %c0_i32 = arith.constant 0 : i32
    return %arg0, %arg1 : i32, i32
  }
  func.func @transform_1(%arg0: i32, %arg1: i32) -> (i32, i32) {
    %c0_i32 = arith.constant 0 : i32
    %c0_i32_0 = arith.constant 0 : i32
    return %arg1, %c0_i32 : i32, i32
  }
  func.func @transform_2(%arg0: i32, %arg1: i32) -> (i32, i32) {
    %c0_i32 = arith.constant 0 : i32
    %c0_i32_0 = arith.constant 0 : i32
    %c0_i32_1 = arith.constant 0 : i32
    return %c0_i32, %c0_i32_0 : i32, i32
  }
  func.func @transform_3(%arg0: i32, %arg1: i32) -> (i32, i32) {
    %c0_i32 = arith.constant 0 : i32
    %c0_i32_0 = arith.constant 0 : i32
    return %c0_i32, %arg0 : i32, i32
  }
  func.func @transform_4(%arg0: i32, %arg1: i32) -> (i32, i32, i32) {
    %c0_i32 = arith.constant 0 : i32
    %c0_i32_0 = arith.constant 0 : i32
    %c0_i32_1 = arith.constant 0 : i32
    return %arg0, %c0_i32, %c0_i32_0 : i32, i32, i32
  }
}

</mosaic_0001>

<bundles_post_ra>
// kernel: tpu_custom_call.1
= control target key start
LH: loop header
LB: loop body
LE: loop exit
PB: predicated region body
PF: predicated region fallthrough
CT: control target
= control target key end

     0   :  { %s1832_s0 = inlined_call_operand.hbm [shape: bf16[256,256], index: 0, kind: input, shape index: {}]   ;;  %s1833_s1 = inlined_call_operand.hbm [shape: bf16[256,128], index: 1, kind: input, shape index: {}]   ;;  %s1834_s2 = inlined_call_operand.vmem [shape: f32[1,128], index: 2, kind: input, shape index: {}]   ;;  %s1835_s3 = inlined_call_operand.vmem [shape: f32[2,256], index: 3, kind: input, shape index: {}]   ;;  %s1836_s4 = inlined_call_operand.hbm [shape: f32[2,2,128], index: 4, kind: output, shape index: {}]  }
   0x1   :  { %1849 = sst [smem:[#allocation17_spill]] %s1832_s0 }
   0x2   :  { %1850 = sst [smem:[#allocation18_spill]] %s1833_s1 }
   0x3   :  { %1851 = sst [smem:[#allocation19_spill]] %s1834_s2 }
   0x4   :  { %1852 = sst [smem:[#allocation20_spill]] %s1835_s3 }
   0x5   :  { %1853 = sst [smem:[#allocation21_spill]] %s1836_s4 }
   0x6   :  { %9 = vsyncpa [#allocation4], 0 }
   0x7   :  { %11 = vsyncpa [#allocation4 + $0x1], 0 }
   0x8   :  { %12 = vsyncpa [#allocation7], 0 }
   0x9   :  { %14 = vsyncpa [#allocation7 + $0x1], 0 }
   0xa   :  { %15 = vsyncpa [#allocation5], 0 }
   0xb   :  { %17 = vsyncpa [#allocation5 + $0x1], 0  ;;  %s1430_s15 = smov 0   ;;  %s1432_s16 = smov 0  }
   0xc   :  { %s1434_s17 = smov 0   ;;  %s1436_s18 = smov 0  }
   0xd   :  { %s1438_s19 = smov 0   ;;  %s1440_s20 = smov 0  }
   0xe   :  { %s1442_s21 = smov 0   ;;  %s1444_s22 = smov 0  }
   0xf   :  { %s1446_s23 = smov 0   ;;  %s1448_s24 = smov 0  }
  0x10   :  { %s1450_s25 = smov 0   ;;  %s1452_s26 = smov 0  }
  0x11   :  { %s1454_s27 = smov 0   ;;  %s1456_s28 = smov 0  }
  0x12 LB: > { %1854 = sst [smem:[#allocation12_spill]] %s1341_s15  ;;  %s32_s29 = sadd.s32 1, %s1385_s26  ;;  %s1393_s28 = sphi %s1456_s28, %s23_s28   ;;  %s1389_s27 = sphi %s1454_s27, %s1903_s27   ;;  %s1385_s26 = sphi %s1452_s26, %s1902_s26   ;;  %s1381_s25 = sphi %s1450_s25, %s1901_s25   ;;  %s1377_s24 = sphi %s1448_s24, %s1900_s24   ;;  %s1373_s23 = sphi %s1446_s23, %s1899_s23   ;;  %s1369_s22 = sphi %s1444_s22, %s1898_s22   ;;  %s1365_s21 = sphi %s1442_s21, %s1897_s21   ;;  %s1361_s20 = sphi %s1440_s20, %s1896_s20   ;;  %s1357_s19 = sphi %s1438_s19, %s1895_s19   ;;  %s1353_s18 = sphi %s1436_s18, %s1894_s18   ;;  %s1349_s17 = sphi %s1434_s17, %s1893_s17   ;;  %s1345_s16 = sphi %s1432_s16, %s1892_s16   ;;  %s1341_s15 = sphi %s1430_s15, %s1891_s15  }
  0x13   : > { %1855 = sst [smem:[#allocation13_spill]] %s1377_s24  ;;  %s35_s30 = sadd.s32 1, %s1389_s27 }
  0x14   : > { %1856 = sst [smem:[#allocation14_spill]] %s1381_s25  ;;  %p33_p0 = scmp.ge.s32.totalorder %s32_s29, 2 }
  0x15   : > { %s44_s5 = sadd.s32 1, %s1373_s23  ;;  %p51_p1 = scmp.ne.s32.totalorder %s1373_s23, %s1369_s22 }
  0x16   : > { %p1842_p2 = scmp.eq.s32.totalorder %s1393_s28, 0  ;;  %s1905_s29 = smov (%p33_p0, %s32_s29), 0 }
  0x17   : > { %1857 = sst [smem:[#allocation15_spill]] %s1905_s29  ;;  %s1907_s30 = smov (!%p33_p0, %s35_s30), %s1389_s27 }
  0x18   : > { %s1511_s6 = ssub.s32 %s1385_s26, %s1905_s29  ;;  %p1515_p3 = por %p1842_p2, %p51_p1 }
  0x19   : > { %p37_p4 = scmp.ge.s32.totalorder %s1907_s30, 2  ;;  %s143_s8 = sadd.s32 1, %s1349_s17 }
  0x1a   : > { %p1841_p7 = scmp.lt.s32.totalorder %s1393_s28, 4  ;;  %s183_s10 = sand.u32 1, %s1373_s23  }
  0x1b   : > { %s1909_s30 = smov (%p37_p4, %s1907_s30), 0  ;;  %s852_s14 = sshll.u32 %s183_s10, 6 }
  0x1c   : > { %1859 = sst [smem:[#allocation16_spill]] %s1909_s30  ;;  %s39_s9 = ssub.s32 %s1389_s27, %s1909_s30 }
  0x1d   : > { %s41_s11 = sor.u32 %s1511_s6, %s39_s9  ;;  %p141_p8 = scmp.eq.s32.totalorder %s39_s9, 0 }
  0x1e   : > { %p42_p9 = scmp.eq.s32.totalorder %s41_s11, 0  ;;  %s887_s29 = sshll.u32 %s1389_s27, 5 }
  0x1f   : > { %s1531_s12 = scalar_select %p141_p8, %s1349_s17, %s143_s8  }
  0x20   : > { %s1534_s13 = scalar_select %p42_p9, %s1373_s23, %s44_s5  }
  0x21   : > { %s193_s4 = sadd.s32 %s1385_s26, %s887_s29  ;;  %s187_s24 = scalar_lea.vmem [#allocation3], %s852_s14 }
  0x22   : > { %s855_s2 = sshll.u32 %s193_s4, 6  ;;  %s196_s3 = sshll.u32 %s187_s24, 4  ;;  %s1543_s3 = int_to_ptr.vmem [resolvable:$true] %s196_s3 }
  0x23   : > { %s1860_s0 = sld [smem:[#allocation17_spill]]  ;;  %p1549_p10 = pnand %p1841_p7, %p1515_p3 }
  0x24   : > { %p859_p11 = scmp.ge.s32.totalorder %s1393_s28, 1  ;;  %s1554_s4 = scalar_lea.sflag [#allocation4], %s183_s10 }
  0x25   : > { %p1185_p13 = pneg %p1549_p10 }
  0x29   : > { %s1541_s15 = scalar_lea.hbm %s1860_s0, %s855_s2  ;;  %s1188_s25 = scalar_lea.hbm %s1860_s0, 4096 }
  0x2a   : > { %s1183_s1 = scalar_lea.hbm %s1541_s15, 1024  ;;  %p1189_p3 = scmp.lt.u32.totalorder %s1541_s15, %s1860_s0 }
  0x2b   : > { %p1184_p12 = scmp.ne.s32.totalorder %s1541_s15, %s1183_s1  ;;  %p1190_p4 = scmp.lt.u32.totalorder %s1188_s25, %s1183_s1 }
  0x2c   : > { %p1192_p9 = scmp.lt.u32.totalorder %s1183_s1, %s1541_s15 }
  0x2d   : > { %p1186_p0 = pnand %p1185_p13, %p1184_p12  ;;  %p1191_p8 = por %p1190_p4, %p1189_p3 }
  0x2f   : > { %p1187_p1 = pneg %p1186_p0  ;;  %p1193_p7 = por %p1192_p9, %p1191_p8 }
  0x31   : > { %p1194_p2 = pnand %p1193_p7, %p1187_p1 }
  0x33   : > { %1197 = shalt.err (!%p1194_p2)
}
  0x34   : > { %s1198_s8 = scalar_lea.vmem %s1543_s3, 1024  ;;  %s1395_s9 = smov [#allocation3]  }
  0x35   : > { %p1199_p12 = scmp.ne.s32.totalorder %s1543_s3, %s1198_s8  ;;  %s1203_s10 = sshll.u32 %s1395_s9, 4  ;;  %s1204_s10 = int_to_ptr.vmem [resolvable:$false] %s1203_s10 }
  0x36   : > { %s1205_s11 = scalar_lea.vmem %s1204_s10, 2048  ;;  %p1206_p6 = scmp.lt.s32.totalorder %s1543_s3, %s1204_s10 }
  0x37   : > { %p1201_p0 = pnand %p1199_p12, %p1185_p13  ;;  %p1207_p3 = scmp.lt.s32.totalorder %s1205_s11, %s1198_s8 }
  0x39   : > { %p1202_p5 = pneg %p1201_p0  ;;  %p1208_p4 = por %p1207_p3, %p1206_p6 }
  0x3b   : > { %p1209_p8 = pnand %p1208_p4, %p1202_p5 }
  0x3d   : > { %1212 = shalt.err (!%p1209_p8)
}
  0x3e   : > { %s1396_s14 = smov 128   ;;  %s1843_s1 = smov 64  }
  0x3f   : > { %s1844_s2 = smov 4   ;;  %s1862_s24 = sld [smem:[#allocation12_spill]] }
  0x40   : > { %1038 = dma.hbm_to_vmem [thread:$0]  (!%p1549_p10), %s1541_s15, 1024, %s1543_s3, %s1554_s4, %s1396_s14, %s1843_s1, %s1844_s2  }
  0x41   : > { %p232_p2 = scmp.lt.s32.totalorder %s1393_s28, 5  ;;  %s848_s29 = sadd.s32 4294967295, %s1393_s28  }
  0x42   : > { %s849_s7 = sadd.s32 4294967294, %s1393_s28   ;;  %p58_p6 = scmp.eq.s32.totalorder %s848_s29, 0 }
  0x43   : > { %p1587_p5 = pnand %p859_p11, %p232_p2  ;;  %s70_s8 = sadd.s32 1, %s1361_s20 }
  0x44   : > { %p1864_p7 = scmp.eq.s32.totalorder %s1511_s6, 0  ;;  %p1865_p13 = scmp.ne.s32.totalorder %s1369_s22, %s1365_s21 }
  0x45   : > { %p77_p10 = scmp.ne.s32.totalorder %s1361_s20, %s1357_s19  ;;  %p83_p11 = scmp.ne.s32.totalorder %s1357_s19, %s1353_s18 }
  0x46   : > { %s1597_s9 = scalar_select %p1864_p7, %s1361_s20, %s70_s8  }
  0x47   : > { %p1602_p1 = por %p58_p6, %p1865_p13  ;;  %p153_p9 = scmp.ne.s32.totalorder %s1349_s17, %s1345_s16 }
  0x48   : > { %p1867_p12 = scmp.eq.s32.totalorder %s1393_s28, 0  ;;  %p154_p3 = scmp.eq.s32.totalorder %s848_s29, 3 }
  0x49   : > { %s1866_s5 = scalar_select %p1602_p1, 1, 0 }
  0x4a   : > { %p79_p0 = por %p77_p10, %p1867_p12  ;;  %p1614_p4 = por %p83_p11, %p58_p6 }
  0x4b   : > { %p159_p8 = scmp.ne.s32.totalorder %s1345_s16, %s1862_s24  ;;  %p1620_p2 = por %p154_p3, %p153_p9 }
  0x4c   : > { %s1868_s3 = scalar_select %p1614_p4, 1, 0 }
  0x4d   : > { %s1869_s15 = scalar_select %p1620_p2, 1, 0 }
  0x4e   : > { %p160_p7 = scmp.eq.s32.totalorder %s849_s7, 3  ;;  %s206_s21 = sand.u32 1, %s1361_s20  }
  0x4f   : > { %s888_s6 = sshll.u32 %s1385_s26, 10  ;;  %s856_s18 = sshll.u32 %s206_s21, 6 }
  0x50   : > { %p1626_p13 = por %p160_p7, %p159_p8  ;;  %s1871_s14 = sld [smem:[#allocation18_spill]] }
  0x51   : > { %p1872_p6 = scmp.lt.s32.totalorder %s1393_s28, 4  ;;  %s210_s7 = scalar_lea.vmem [#allocation6], %s856_s18 }
  0x52   : > { %s1870_s4 = scalar_select %p1626_p13, 1, 0 }
  0x53   : > { %p1637_p10 = pnand %p1872_p6, %p79_p0  ;;  %s217_s8 = sshll.u32 %s210_s7, 4  ;;  %s1641_s8 = int_to_ptr.vmem [resolvable:$true] %s217_s8 }
  0x54   : > { %s1643_s1 = scalar_lea.sflag [#allocation7], %s206_s21 }
  0x55   : > { %p1215_p9 = pneg %p1637_p10 }
  0x56   : > { %s1633_s29 = scalar_lea.hbm %s1871_s14, %s888_s6  ;;  %s1218_s2 = scalar_lea.hbm %s1871_s14, 2048 }
  0x57   : > { %s1213_s10 = scalar_lea.hbm %s1633_s29, 1024  ;;  %p1219_p0 = scmp.lt.u32.totalorder %s1633_s29, %s1871_s14 }
  0x58   : > { %p1214_p11 = scmp.ne.s32.totalorder %s1633_s29, %s1213_s10  ;;  %p1220_p8 = scmp.lt.u32.totalorder %s1218_s2, %s1213_s10 }
  0x59   : > { %p1222_p6 = scmp.lt.u32.totalorder %s1213_s10, %s1633_s29 }
  0x5a   : > { %p1216_p12 = pnand %p1215_p9, %p1214_p11  ;;  %p1221_p7 = por %p1220_p8, %p1219_p0 }
  0x5c   : > { %p1217_p3 = pneg %p1216_p12  ;;  %p1223_p13 = por %p1222_p6, %p1221_p7 }
  0x5e   : > { %p1224_p2 = pnand %p1223_p13, %p1217_p3 }
  0x60   : > { %1227 = shalt.err (!%p1224_p2)
}
  0x61   : > { %s1228_s21 = scalar_lea.vmem %s1641_s8, 1024  ;;  %s1399_s18 = smov [#allocation6]  }
  0x62   : > { %p1229_p11 = scmp.ne.s32.totalorder %s1641_s8, %s1228_s21  ;;  %s1233_s7 = sshll.u32 %s1399_s18, 4  ;;  %s1234_s7 = int_to_ptr.vmem [resolvable:$false] %s1233_s7 }
  0x63   : > { %s1235_s0 = scalar_lea.vmem %s1234_s7, 2048  ;;  %p1236_p1 = scmp.lt.s32.totalorder %s1641_s8, %s1234_s7 }
  0x64   : > { %p1231_p12 = pnand %p1229_p11, %p1215_p9  ;;  %p1237_p0 = scmp.lt.s32.totalorder %s1235_s0, %s1228_s21 }
  0x66   : > { %p1232_p4 = pneg %p1231_p12  ;;  %p1238_p8 = por %p1237_p0, %p1236_p1 }
  0x68   : > { %p1239_p7 = pnand %p1238_p8, %p1232_p4 }
  0x6a   : > { %1242 = shalt.err (!%p1239_p7)
}
  0x6b   : > { %s1874_s30 = smov 4   ;;  %s1875_s2 = smov 64  }
  0x6c   : > { %1041 = dma.hbm_to_vmem [thread:$0]  (!%p1637_p10), %s1633_s29, 1024, %s1641_s8, %s1643_s1, %s1875_s2, %s1875_s2, %s1874_s30  }
  0x6d   : > { %236 = sbr.rel (%p1587_p5) target bundleno = 674 (0x2a2), region = 36  ;;  %s238_s10 = sand.u32 (!%p1587_p5), 1, %s1369_s22  }
  0x6e   : > { %s860_s6 = sshll.u32 (!%p1587_p5), %s238_s10, 6  ;;  %s239_s11 = scalar_lea.sflag (!%p1587_p5), [#allocation4], %s238_s10 }
  0x6f   : > { %s1677_s21 = scalar_lea.vmem (!%p1587_p5), [#allocation3], %s860_s6  ;;  %p1876_p1 = scmp.ne.s32.totalorder (!%p1587_p5), %s1866_s5, 0 }
  0x74   : > { %1328 = dma.done.wait (%p1876_p1), %s239_s11, 1024  }
  0x75   : > { %1330 = vsyncadd (%p1876_p1), %s239_s11, 4294966272  ;;  %s247_s24 = sand.u32 1, %s1357_s19   ;;  %p1877_p5 = scmp.ne.s32.totalorder %s1868_s3, 0 }
  0x76   : > { %s861_s18 = sshll.u32 %s247_s24, 6  ;;  %s248_s1 = scalar_lea.sflag [#allocation7], %s247_s24 }
  0x77   : > { %s1684_s29 = scalar_lea.vmem [#allocation6], %s861_s18 }
  0x78   : > { %1332 = dma.done.wait (%p1877_p5), %s248_s1, 1024  }
  0x79   : > { %1334 = vsyncadd (%p1877_p5), %s248_s1, 4294966272  ;;  %s1878_s25 = sld [smem:[#allocation14_spill]]  ;;  %s282_s8 = sand.u32 1, %s1345_s16  }
  0x7a   : > { %s1694_s5 = sshll.u32 %s282_s8, 1  ;;  %s1879_s2 = sld [smem:[#allocation20_spill]] }
  0x7b   : > { %s284_s6 = scalar_lea.vmem [#allocation8], %s1694_s5  ;;  %s1880_s3 = sld [smem:[#allocation13_spill]] }
  0x7f   : > { %p287_p4 = scmp.lt.s32.totalorder %s1878_s25, 1 }
  0x81   : > { %s1911_s25 = smov (!%p287_p4, %s1878_s25), 1  ;;  %p864_p2 = scmp.ne.s32.totalorder %s1880_s3, 0 }
  0x82   : > { %s863_s7 = sshll.u32 %s1911_s25, 1  ;;  %v1400_v0 = vmov (!%p864_p2), 0.0  }
  0x83   : > { %s1700_s10 = scalar_lea.vmem %s1879_s2, %s863_s7  ;;  %295 = sbr.rel (%p864_p2) target bundleno = 139 (0x8b), region = 48  ;;  %296 = vst [vmem:[#allocation2] sm:$0xff] (!%p864_p2), %v1400_v0  ;;  %297 = vst [vmem:[#allocation2 + $0x8] sm:$0xff] (!%p864_p2), %v1400_v0 }
  0x84   : > { %298 = vst [vmem:[#allocation2 + $0x10] sm:$0xff] (!%p864_p2), %v1400_v0  ;;  %299 = vst [vmem:[#allocation2 + $0x18] sm:$0xff] (!%p864_p2), %v1400_v0 }
  0x85   : > { %300 = vst [vmem:[#allocation2 + $0x20] sm:$0xff] (!%p864_p2), %v1400_v0  ;;  %301 = vst [vmem:[#allocation2 + $0x28] sm:$0xff] (!%p864_p2), %v1400_v0 }
  0x86   : > { %302 = vst [vmem:[#allocation2 + $0x30] sm:$0xff] (!%p864_p2), %v1400_v0  ;;  %303 = vst [vmem:[#allocation2 + $0x38] sm:$0xff] (!%p864_p2), %v1400_v0 }
  0x87   : > { %304 = vst [vmem:[#allocation2 + $0x40] sm:$0xff] (!%p864_p2), %v1400_v0  ;;  %305 = vst [vmem:[#allocation2 + $0x48] sm:$0xff] (!%p864_p2), %v1400_v0 }
  0x88   : > { %306 = vst [vmem:[#allocation2 + $0x50] sm:$0xff] (!%p864_p2), %v1400_v0  ;;  %307 = vst [vmem:[#allocation2 + $0x58] sm:$0xff] (!%p864_p2), %v1400_v0 }
  0x89   : > { %308 = vst [vmem:[#allocation2 + $0x60] sm:$0xff] (!%p864_p2), %v1400_v0  ;;  %309 = vst [vmem:[#allocation2 + $0x68] sm:$0xff] (!%p864_p2), %v1400_v0 }
  0x8a   : > { %310 = vst [vmem:[#allocation2 + $0x70] sm:$0xff] %v1400_v0  ;;  %311 = vst [vmem:[#allocation2 + $0x78] sm:$0xff] %v1400_v0 }
  0x8b PF: > { %v1167_v1 = vld [vmem:[%s1684_s29] sm:$0xff]   ;;  %v1168_v2 = vld [vmem:[%s1684_s29 + $0x8] sm:$0xff]   ;;  %v1169_v3 = vld [vmem:[%s1684_s29 + $0x10] sm:$0xff]   ;;  %s1881_s11 = sld [smem:[#allocation13_spill]] }
  0x8c   : > { %922 = vmatprep.subr.bf16.mxu0 %v1167_v1  ;;  %1013 = vmatprep.subr.bf16.mxu1 %v1167_v1  ;;  %v1170_v4 = vld [vmem:[%s1684_s29 + $0x18] sm:$0xff]   ;;  %v1175_v5 = vld [vmem:[%s1677_s21] sm:$0xff]   ;;  %v1172_v8 = vld [vmem:[%s1684_s29 + $0x28] sm:$0xff]  }
  0x8d   : > { %923 = vmatpush3.bf16.msra.mxu0 %v1167_v1  ;;  %1021 = vmatpush3.bf16.msra.mxu1 %v1167_v1  ;;  %v1176_v6 = vld [vmem:[%s1677_s21 + $0x20] sm:$0xff]   ;;  %v1173_v9 = vld [vmem:[%s1684_s29 + $0x30] sm:$0xff]   ;;  %v1174_v10 = vld [vmem:[%s1684_s29 + $0x38] sm:$0xff]  }
  0x8e   : > { %924 = vmatprep.subr.bf16.mxu0 %v1168_v2  ;;  %1014 = vmatprep.subr.bf16.mxu1 %v1168_v2  ;;  %v1171_v7 = vld [vmem:[%s1684_s29 + $0x20] sm:$0xff]   ;;  %v1177_v11 = vld [vmem:[%s1677_s21 + $0x8] sm:$0xff]   ;;  %v1179_v13 = vld [vmem:[%s1677_s21 + $0x10] sm:$0xff]  }
  0x8f   : > { %938 = vmatprep.mubr.bf16.mxu0 %v1175_v5  ;;  %946 = vmatprep.mubr.bf16.mxu1 %v1176_v6  ;;  %v1178_v12 = vld [vmem:[%s1677_s21 + $0x28] sm:$0xff]   ;;  %v1180_v14 = vld [vmem:[%s1677_s21 + $0x30] sm:$0xff]   ;;  %v1181_v15 = vld [vmem:[%s1677_s21 + $0x18] sm:$0xff]  }
  0x90   : > { %v1182_v16 = vld [vmem:[%s1677_s21 + $0x38] sm:$0xff]   ;;  %v314_v17 = vld [vmem:[#allocation2 + $0x10] sm:$0xff]  ;;  %v312_v19 = vld [vmem:[#allocation2] sm:$0xff] }
  0x91   : > { %925 = vmatpush3.bf16.msra.mxu0 %v1168_v2  ;;  %1022 = vmatpush3.bf16.msra.mxu1 %v1168_v2  ;;  %v322_v18 = vld [vmem:[#allocation2 + $0x50] sm:$0xff]  ;;  %v320_v20 = vld [vmem:[#allocation2 + $0x40] sm:$0xff]  ;;  %v315_v23 = vld [vmem:[#allocation2 + $0x18] sm:$0xff]  ;;  %p881_p13 = scmp.ne.s32.totalorder %s1881_s11, 1 }
  0x92   : > { %926 = vmatprep.subr.bf16.mxu0 %v1169_v3  ;;  %1015 = vmatprep.subr.bf16.mxu1 %v1169_v3  ;;  %v323_v24 = vld [vmem:[#allocation2 + $0x58] sm:$0xff]  ;;  %v313_v29 = vld [vmem:[#allocation2 + $0x8] sm:$0xff]  ;;  %v318_v41 = vld [vmem:[#allocation2 + $0x30] sm:$0xff]  ;;  %s1882_s18 = sld [smem:[#allocation19_spill]] (!%p881_p13)  ;;  %vm1402_vm0 = vmmov (!%p881_p13), 0  }
  0x93   : > { %v321_v30 = vld [vmem:[#allocation2 + $0x48] sm:$0xff]  ;;  %v326_v42 = vld [vmem:[#allocation2 + $0x70] sm:$0xff]  ;;  %v316_v43 = vld [vmem:[#allocation2 + $0x20] sm:$0xff] }
  0x94   : > { %v324_v44 = vld [vmem:[#allocation2 + $0x60] sm:$0xff]  ;;  %v319_v47 = vld [vmem:[#allocation2 + $0x38] sm:$0xff]  ;;  %v317_v53 = vld [vmem:[#allocation2 + $0x28] sm:$0xff] }
  0x95   : > { %927 = vmatpush3.bf16.msra.mxu0 %v1169_v3  ;;  %1023 = vmatpush3.bf16.msra.mxu1 %v1169_v3  ;;  %v327_v48 = vld [vmem:[#allocation2 + $0x78] sm:$0xff]  ;;  %v325_v54 = vld [vmem:[#allocation2 + $0x68] sm:$0xff] }
  0x96   : > { %928 = vmatprep.subr.bf16.mxu0 %v1170_v4  ;;  %1016 = vmatprep.subr.bf16.mxu1 %v1170_v4 }
  0x98   : > { %v1724_v3 = vld [vmem:[%s1882_s18] ss:$0 sm:$0xff] (!%p881_p13) }
  0x99   : > { %929 = vmatpush3.bf16.msra.mxu0 %v1170_v4  ;;  %1024 = vmatpush3.bf16.msra.mxu1 %v1170_v4  ;;  %v1401_v4 = vmov (!%p881_p13), 0.0|0.0  }
  0x9a   : > { %930 = vmatprep.subr.bf16.mxu0 %v1171_v7  ;;  %1017 = vmatprep.subr.bf16.mxu1 %v1171_v7 }
  0x9d   : > { %931 = vmatpush3.bf16.msra.mxu0 %v1171_v7  ;;  %1025 = vmatpush3.bf16.msra.mxu1 %v1171_v7 }
  0x9e   : > { %932 = vmatprep.subr.bf16.mxu0 %v1172_v8  ;;  %1018 = vmatprep.subr.bf16.mxu1 %v1172_v8 }
  0xa1   : > { %933 = vmatpush3.bf16.msra.mxu0 %v1172_v8  ;;  %1026 = vmatpush3.bf16.msra.mxu1 %v1172_v8 }
  0xa2   : > { %934 = vmatprep.subr.bf16.mxu0 %v1173_v9  ;;  %1019 = vmatprep.subr.bf16.mxu1 %v1173_v9 }
  0xa5   : > { %935 = vmatpush3.bf16.msra.mxu0 %v1173_v9  ;;  %1027 = vmatpush3.bf16.msra.mxu1 %v1173_v9 }
  0xa6   : > { %936 = vmatprep.subr.bf16.mxu0 %v1174_v10  ;;  %1020 = vmatprep.subr.bf16.mxu1 %v1174_v10 }
  0xa9   : > { %937 = vmatpush3.bf16.msra.mxu0 %v1174_v10  ;;  %1028 = vmatpush3.bf16.msra.mxu1 %v1174_v10 }
  0xaa   : > { %989 = vmatprep.subr.bf16.mxu0 (!%p881_p13), %v1401_v4 }
  0xac   : > { %939 = vmatmul.mubr.bf16.vlgmr.msra.gmra.mrb[0].mxu0 %v1177_v11  ;;  %947 = vmatmul.mubr.bf16.vlgmr.msra.gmra.mrb[0].mxu1 %v1178_v12 }
  0xad   : > { %942 = vmatprep.mubr.bf16.mxu0 %v1179_v13  ;;  %950 = vmatprep.mubr.bf16.mxu1 %v1180_v14  ;;  %v1403_v13 = vmov (!%p881_p13), 0.0  }
  0xb4   : > { %943 = vmatmul.mubr.bf16.gmra.mrb[4].mxu0 %v1181_v15  ;;  %951 = vmatmul.mubr.bf16.gmra.mrb[4].mxu1 %v1182_v16 }
  0xb5   : > { %986 = vmatprep.mubr.msk.f32.mxu0 (!%p881_p13), %vm1402_vm0, %v1403_v13 }
 0x17f   : > { %v940_v21 = vpop.f32.mrb[0].mxu0  ;;  %v948_v22 = vpop.f32.mrb[0].mxu1 }
 0x180   : > { %v555_v25 = vadd.f32 %v940_v21, %v314_v17  ;;  %v563_v26 = vadd.f32 %v948_v22, %v322_v18  ;;  %v490_v27 = vpop.f32.mrb[1].mxu0  ;;  %v522_v28 = vpop.f32.mrb[1].mxu1 }
 0x181   : > { %v553_v31 = vadd.f32 %v490_v27, %v312_v19  ;;  %v561_v32 = vadd.f32 %v522_v28, %v320_v20  ;;  %v941_v33 = vpop.f32.mrb[2].mxu0  ;;  %v949_v34 = vpop.f32.mrb[2].mxu1 }
 0x182   : > { %571 = vst [vmem:[#allocation2 + $0x10] sm:$0xff] %v555_v25  ;;  %579 = vst [vmem:[#allocation2 + $0x50] sm:$0xff] %v563_v26  ;;  %v556_v35 = vadd.f32 %v941_v33, %v315_v23  ;;  %v564_v36 = vadd.f32 %v949_v34, %v323_v24  ;;  %v493_v37 = vpop.f32.mrb[3].mxu0  ;;  %v525_v38 = vpop.f32.mrb[3].mxu1 }
 0x183   : > { %569 = vst [vmem:[#allocation2] sm:$0xff] %v553_v31  ;;  %577 = vst [vmem:[#allocation2 + $0x40] sm:$0xff] %v561_v32  ;;  %v554_v39 = vadd.f32 %v493_v37, %v313_v29  ;;  %v562_v40 = vadd.f32 %v525_v38, %v321_v30 }
 0x184   : > { %572 = vst [vmem:[#allocation2 + $0x18] sm:$0xff] %v556_v35  ;;  %580 = vst [vmem:[#allocation2 + $0x58] sm:$0xff] %v564_v36 }
 0x185   : > { %570 = vst [vmem:[#allocation2 + $0x8] sm:$0xff] %v554_v39  ;;  %578 = vst [vmem:[#allocation2 + $0x48] sm:$0xff] %v562_v40 }
 0x187   : > { %v944_v45 = vpop.f32.mrb[4].mxu0  ;;  %v952_v46 = vpop.f32.mrb[4].mxu1  ;;  %588 = sbr.rel (%p881_p13) target bundleno = 647 (0x287), region = 52 }
 0x188   : > { %v559_v49 = vadd.f32 %v944_v45, %v318_v41  ;;  %v567_v50 = vadd.f32 %v952_v46, %v326_v42  ;;  %v506_v51 = vpop.f32.mrb[5].mxu0  ;;  %v538_v52 = vpop.f32.mrb[5].mxu1 }
 0x189   : > { %v557_v55 = vadd.f32 %v506_v51, %v316_v43  ;;  %v565_v56 = vadd.f32 %v538_v52, %v324_v44  ;;  %v945_v57 = vpop.f32.mrb[6].mxu0  ;;  %v953_v58 = vpop.f32.mrb[6].mxu1  ;;  %v591_v7 = vld [vmem:[#allocation2 + $0x10] sm:$0xff] (!%p881_p13) }
 0x18a   : > { %575 = vst [vmem:[#allocation2 + $0x30] sm:$0xff] %v559_v49  ;;  %583 = vst [vmem:[#allocation2 + $0x70] sm:$0xff] %v567_v50  ;;  %v560_v59 = vadd.f32 %v945_v57, %v319_v47  ;;  %v568_v60 = vadd.f32 %v953_v58, %v327_v48  ;;  %v509_v61 = vpop.f32.mrb[7].mxu0  ;;  %v541_v62 = vpop.f32.mrb[7].mxu1  ;;  %v589_v1 = vld [vmem:[#allocation2] sm:$0xff] (!%p881_p13)  ;;  %v614_v10 = vadd.f32 (!%p881_p13), %v1724_v3, %v591_v7  ;;  %v599_v35 = vld [vmem:[#allocation2 + $0x50] sm:$0xff] (!%p881_p13) }
 0x18b   : > { %573 = vst [vmem:[#allocation2 + $0x20] sm:$0xff] %v557_v55  ;;  %581 = vst [vmem:[#allocation2 + $0x60] sm:$0xff] %v565_v56  ;;  %v558_v63 = vadd.f32 %v509_v61, %v317_v53  ;;  %v566_v0 = vadd.f32 %v541_v62, %v325_v54  ;;  %v612_v5 = vadd.f32 (!%p881_p13), %v1724_v3, %v589_v1  ;;  %v592_v8 = vld [vmem:[#allocation2 + $0x18] sm:$0xff] (!%p881_p13)  ;;  %v597_v28 = vld [vmem:[#allocation2 + $0x40] sm:$0xff] (!%p881_p13) }
 0x18c   : > { %576 = vst [vmem:[#allocation2 + $0x38] sm:$0xff] %v560_v59  ;;  %584 = vst [vmem:[#allocation2 + $0x78] sm:$0xff] %v568_v60  ;;  %v590_v2 = vld [vmem:[#allocation2 + $0x8] sm:$0xff] (!%p881_p13)  ;;  %v615_v11 = vadd.f32 (!%p881_p13), %v1724_v3, %v592_v8  ;;  %v630_v19 = vmax.f32 (!%p881_p13), %v614_v10, 0.0  ;;  %v620_v33 = vadd.f32 (!%p881_p13), %v1724_v3, %v597_v28  ;;  %v600_v36 = vld [vmem:[#allocation2 + $0x58] sm:$0xff] (!%p881_p13)  ;;  %v622_v37 = vadd.f32 (!%p881_p13), %v1724_v3, %v599_v35 }
 0x18d   : > { %574 = vst [vmem:[#allocation2 + $0x28] sm:$0xff] %v558_v63  ;;  %582 = vst [vmem:[#allocation2 + $0x68] sm:$0xff] %v566_v0  ;;  %v613_v6 = vadd.f32 (!%p881_p13), %v1724_v3, %v590_v2  ;;  %v628_v14 = vmax.f32 (!%p881_p13), %v612_v5, 0.0  ;;  %v598_v29 = vld [vmem:[#allocation2 + $0x48] sm:$0xff] (!%p881_p13)  ;;  %v623_v41 = vadd.f32 (!%p881_p13), %v1724_v3, %v600_v36  ;;  %v644_v60 = vld [vmem:[%s1700_s10] sm:$0x3] (!%p881_p13) }
 0x18e   : > { %v631_v20 = vmax.f32 %v615_v11, 0.0  ;;  %v621_v34 = vadd.f32 %v1724_v3, %v598_v29  ;;  %v636_v39 = vmax.f32 %v620_v33, 0.0  ;;  %v638_v46 = vmax.f32 %v622_v37, 0.0 }
 0x18f   : > { %v629_v15 = vmax.f32 %v613_v6, 0.0  ;;  %v639_v47 = vmax.f32 %v623_v41, 0.0 }
 0x190   : > { %v993_v24 = vpack.c.bf16 %v631_v20, %v630_v19  ;;  %v637_v40 = vmax.f32 %v621_v34, 0.0 }
 0x191   : > { %v595_v18 = vld [vmem:[#allocation2 + $0x30] sm:$0xff]  ;;  %v990_v22 = vpack.c.bf16 %v629_v15, %v628_v14  ;;  %v1005_v52 = vpack.c.bf16 %v639_v47, %v638_v46 }
 0x192   : > { %v593_v9 = vld [vmem:[#allocation2 + $0x20] sm:$0xff]  ;;  %v618_v23 = vadd.f32 %v1724_v3, %v595_v18  ;;  %v1002_v45 = vpack.c.bf16 %v637_v40, %v636_v39  ;;  %v603_v49 = vld [vmem:[#allocation2 + $0x70] sm:$0xff] }
 0x193   : > { %v616_v16 = vadd.f32 %v1724_v3, %v593_v9  ;;  %v596_v21 = vld [vmem:[#allocation2 + $0x38] sm:$0xff]  ;;  %991 = vmatpush3.bf16.msra.mxu0 %v990_v22  ;;  %v601_v42 = vld [vmem:[#allocation2 + $0x60] sm:$0xff]  ;;  %v626_v54 = vadd.f32 %v1724_v3, %v603_v49 }
 0x194   : > { %v594_v12 = vld [vmem:[#allocation2 + $0x28] sm:$0xff]  ;;  %v619_v27 = vadd.f32 %v1724_v3, %v596_v21  ;;  %992 = vmatprep.subr.bf16.mxu0 %v1401_v4  ;;  %v634_v30 = vmax.f32 %v618_v23, 0.0  ;;  %v624_v44 = vadd.f32 %v1724_v3, %v601_v42  ;;  %v604_v50 = vld [vmem:[#allocation2 + $0x78] sm:$0xff] }
 0x195   : > { %v617_v17 = vadd.f32 %v1724_v3, %v594_v12  ;;  %v632_v25 = vmax.f32 %v616_v16, 0.0  ;;  %v602_v43 = vld [vmem:[#allocation2 + $0x68] sm:$0xff]  ;;  %v627_v55 = vadd.f32 %v1724_v3, %v604_v50  ;;  %v642_v57 = vmax.f32 %v626_v54, 0.0 }
 0x196   : > { %v635_v32 = vmax.f32 %v619_v27, 0.0  ;;  %v625_v48 = vadd.f32 %v1724_v3, %v602_v43  ;;  %v640_v51 = vmax.f32 %v624_v44, 0.0 }
 0x197   : > { %v633_v26 = vmax.f32 %v617_v17, 0.0  ;;  %994 = vmatpush3.bf16.msra.mxu0 %v993_v24  ;;  %v643_v58 = vmax.f32 %v627_v55, 0.0 }
 0x198   : > { %995 = vmatprep.subr.bf16.mxu0 %v1401_v4  ;;  %v999_v38 = vpack.c.bf16 %v635_v32, %v634_v30  ;;  %v641_v53 = vmax.f32 %v625_v48, 0.0 }
 0x199   : > { %v996_v31 = vpack.c.bf16 %v633_v26, %v632_v25  ;;  %v1011_v59 = vpack.c.bf16 %v643_v58, %v642_v57 }
 0x19a   : > { %v1008_v56 = vpack.c.bf16 %v641_v53, %v640_v51 }
 0x19b   : > { %997 = vmatpush3.bf16.msra.mxu0 %v996_v31 }
 0x19c   : > { %998 = vmatprep.subr.bf16.mxu0 %v1401_v4 }
 0x19f   : > { %1000 = vmatpush3.bf16.msra.mxu0 %v999_v38 }
 0x1a0   : > { %1001 = vmatprep.subr.bf16.mxu0 %v1401_v4 }
 0x1a3   : > { %1003 = vmatpush3.bf16.msra.mxu0 %v1002_v45 }
 0x1a4   : > { %1004 = vmatprep.subr.bf16.mxu0 %v1401_v4 }
 0x1a7   : > { %1006 = vmatpush3.bf16.msra.mxu0 %v1005_v52 }
 0x1a8   : > { %1007 = vmatprep.subr.bf16.mxu0 %v1401_v4 }
 0x1ab   : > { %1009 = vmatpush3.bf16.msra.mxu0 %v1008_v56 }
 0x1ac   : > { %1010 = vmatprep.subr.bf16.mxu0 %v1401_v4 }
 0x1af   : > { %1012 = vmatpush3.bf16.msra.mxu0 %v1011_v59 }
 0x1b2   : > { %987 = vmatmul.mubr.f32.vlgmr.msra.gmra.mrb[0].mxu0 %v644_v60 }
 0x285   : > { %v711_v61 = vpop.f32.mrb[0].mxu0 }
 0x286   : > { %715 = vst [vmem:[%s284_s6] sm:$0x3] %v711_v61  ;;  %v988_v62 = vpop.f32.mrb[1].mxu0 }
 0x287 PF: > { %s1883_s1 = sld [smem:[#allocation14_spill]]  ;;  %s1884_s0 = sld [smem:[#allocation21_spill]] }
 0x288   : > { %s730_s2 = sshll.u32 %s284_s6, 4  ;;  %s717_s10 = scalar_lea.sflag [#allocation5], %s282_s8  ;;  %s731_s2 = int_to_ptr.vmem [resolvable:$true] %s730_s2 }
 0x289   : > { %s1243_s3 = scalar_lea.vmem %s731_s2, 32  ;;  %p1885_p9 = scmp.ne.s32.totalorder %s1869_s15, 0 }
 0x28a   : > { %p1244_p10 = scmp.ne.s32.totalorder %s731_s2, %s1243_s3  ;;  %s1404_s11 = smov [#allocation8]  }
 0x28b   : > { %s1247_s21 = sshll.u32 %s1404_s11, 4  ;;  %s1248_s21 = int_to_ptr.vmem [resolvable:$false] %s1247_s21 }
 0x28c   : > { %p1245_p3 = pnand %p1244_p10, %p1885_p9  ;;  %s1249_s24 = scalar_lea.vmem %s1248_s21, 64 }
 0x28d   : > { %s884_s29 = sshll.u32 %s1883_s1, 5  ;;  %p1250_p11 = scmp.lt.s32.totalorder %s731_s2, %s1248_s21 }
 0x28e   : > { %s1757_s30 = scalar_lea.hbm %s1884_s0, %s884_s29  ;;  %p1246_p6 = pneg %p1245_p3 }
 0x28f   : > { %p1251_p12 = scmp.lt.s32.totalorder %s1249_s24, %s1243_s3 }
 0x291   : > { %p1252_p0 = por %p1251_p12, %p1250_p11 }
 0x293   : > { %p1253_p8 = pnand %p1252_p0, %p1246_p6 }
 0x295   : > { %1256 = shalt.err (!%p1253_p8)
}
 0x296   : > { %s1257_s8 = scalar_lea.hbm %s1757_s30, 32  ;;  %s1261_s18 = scalar_lea.hbm %s1884_s0, 64 }
 0x297   : > { %p1258_p7 = scmp.ne.s32.totalorder %s1757_s30, %s1257_s8  ;;  %p1262_p4 = scmp.lt.u32.totalorder %s1757_s30, %s1884_s0 }
 0x298   : > { %p1263_p2 = scmp.lt.u32.totalorder %s1261_s18, %s1257_s8  ;;  %p1265_p10 = scmp.lt.u32.totalorder %s1257_s8, %s1757_s30 }
 0x299   : > { %p1259_p1 = pnand %p1258_p7, %p1885_p9 }
 0x29a   : > { %p1264_p13 = por %p1263_p2, %p1262_p4 }
 0x29b   : > { %p1260_p5 = pneg %p1259_p1 }
 0x29c   : > { %p1266_p3 = por %p1265_p10, %p1264_p13 }
 0x29e   : > { %p1267_p6 = pnand %p1266_p3, %p1260_p5 }
 0x2a0   : > { %1270 = shalt.err (!%p1267_p6)
}
 0x2a1   : > { %1033 = dma.vmem_to_hbm [thread:$0]  (%p1885_p9), %s731_s2, 32, %s1757_s30, %s717_s10  }
 0x2a2 PF: > { %s1886_s25 = sld [smem:[#allocation12_spill]]  ;;  %p1047_p11 = scmp.ge.s32.totalorder %s1393_s28, 2 }
 0x2a3   : > { %p1887_p12 = scmp.ne.s32.totalorder %s1870_s4, 0 }
 0x2a5   : > { %p1043_p0 = pnand %p1047_p11, %p1887_p12 }
 0x2a8   : > { %s742_s7 = sand.u32 1, %s1886_s25  }
 0x2a9   : > { %s743_s3 = scalar_lea.sflag [#allocation5], %s742_s7 }
 0x2aa   : > { %1336 = dma.done.wait (!%p1043_p0), %s743_s3, 32  }
 0x2ab   : > { %1338 = vsyncadd (!%p1043_p0), %s743_s3, 4294967264  ;;  %s23_s28 = sadd.s32 1, %s1393_s28   ;;  %s1889_s4 = sld [smem:[#allocation15_spill]] }
 0x2ac   : > { %p1785_p8 = scmp.ge.s32.totalorder %s23_s28, 6   ;;  %s1890_s30 = sld [smem:[#allocation16_spill]] }
 0x2ad   : > { %s1891_s15 = smov %s1345_s16  ;;  %s1892_s16 = smov %s1349_s17 }
 0x2ae   : > { %s1893_s17 = smov %s1531_s12  ;;  %s1894_s18 = smov %s1357_s19 }
 0x2af   : > { %s1895_s19 = smov %s1361_s20  ;;  %s1896_s20 = smov %s1597_s9 }
 0x2b0   : > { %s1897_s21 = smov %s1369_s22  ;;  %s1898_s22 = smov %s1373_s23 }
 0x2b1   : > { %s1899_s23 = smov %s1534_s13  ;;  %s1900_s24 = smov %s1385_s26 }
 0x2b2   : > { %s1901_s25 = smov %s1389_s27  ;;  %s1902_s26 = smov %s1889_s4 }
 0x2b3   : > { %s1903_s27 = smov %s1890_s30  ;;  %22 = sbr.rel (!%p1785_p8) target bundleno = 18 (0x12), region = 105 }
 0x2ba   :  { %748 = vsyncpa [#allocation4], 1 }
 0x2bb   :  { %750 = vsyncpa [#allocation4 + $0x1], 1 }
 0x2bc   :  { %751 = vsyncpa [#allocation7], 1 }
 0x2bd   :  { %753 = vsyncpa [#allocation7 + $0x1], 1 }
 0x2be   :  { %754 = vsyncpa [#allocation5], 1 }
 0x2bf   :  { %756 = vsyncpa [#allocation5 + $0x1], 1 }

</bundles_post_ra>
